<compile_context>
chip_gen: v6e
topology: v6e:2x2x1
jax: 0.10.0
libtpu: 0.0.40
codegen_flags: <defaults>
</compile_context>

<pallas_src>
import math
import jax
import jax.numpy as jnp
from jax.experimental import pallas as pl
from jax.experimental.pallas import tpu as pltpu

# ---- config (small, consistent with the ViTConfig fields used by the module) ----
BATCH = 2
SEQ = 8
HIDDEN = 32
NUM_HEADS = 4
HEAD_DIM = HIDDEN // NUM_HEADS


def vit_attention_kernel(x_ref, wqkv_ref, wo_ref, bqkv_ref, bo_ref, mask_ref, out_ref):
    N = BATCH * SEQ
    H = HIDDEN
    dh = HEAD_DIM

    x = x_ref[...]            # (N, H)      bf16
    wqkv = wqkv_ref[...]      # (H, 3H)     bf16  (Wq columns pre-scaled by 1/sqrt(dh))
    wo = wo_ref[...]          # (H, H)      bf16
    bqkv = bqkv_ref[...]      # (1, 3H)     f32   (bq pre-scaled)
    bo = bo_ref[...]          # (1, H)      f32
    mask = mask_ref[...]      # (nH*N, N)   f32   block-diagonal additive mask, tiled over heads

    # Fused QKV projection: one wide MXU push, f32 accumulation, single fused bias add.
    qkv = jnp.dot(x, wqkv, preferred_element_type=jnp.float32) + bqkv        # (N, 3H) f32
    qkv16 = qkv.astype(jnp.bfloat16)
    q = qkv16[:, 0:H]                                   # (N, H) bf16, already scaled
    v = qkv16[:, 2 * H:3 * H]                           # (N, H) bf16
    # Single K transpose (done in f32 before the bf16 cast), sublane-sliced per head.
    kT = qkv[:, H:2 * H].T.astype(jnp.bfloat16)         # (H, N) bf16

    # Per-head score matmuls (plain jnp.dot, MXU fast path), sublane-stacked so the
    # softmax reductions/elementwise run ONCE over all heads.
    s_blocks = [
        jnp.dot(q[:, h * dh:(h + 1) * dh], kT[h * dh:(h + 1) * dh, :],
                preferred_element_type=jnp.float32)
        for h in range(NUM_HEADS)
    ]
    s = jnp.concatenate(s_blocks, axis=0) + mask        # (nH*N, N) f32
    s = s - jnp.max(s, axis=-1, keepdims=True)          # one XLU row-max
    p = jnp.exp(s)                                      # one EUP exp
    p = p * pl.reciprocal(jnp.sum(p, axis=-1, keepdims=True), approx=True)
    p = p.astype(jnp.bfloat16)

    # Per-head context, lane-concatenated into one (N, H) tile (no per-head Wo matmuls).
    ctx = jnp.concatenate(
        [jnp.dot(p[h * N:(h + 1) * N, :], v[:, h * dh:(h + 1) * dh],
                 preferred_element_type=jnp.float32)
         for h in range(NUM_HEADS)],
        axis=1)                                          # (N, H) f32

    # ViTSelfOutput: single dense projection + bias; store bf16 (narrow-lane writeback).
    out = jnp.dot(ctx.astype(jnp.bfloat16), wo, preferred_element_type=jnp.float32) + bo
    out_ref[...] = out.astype(out_ref.dtype)

    # TODO(synk): at real ViT sizes (S~197, H=768, 12 heads) replace this single-shot,
    # unrolled-head design with a (batch, head)-parallel grid (engages v7x's 2nd
    # TensorCore) + flash-style KV tiling with the KV axis last; budget tiles against
    # 64 MiB physical VMEM on v7x (32 MiB default scoped; 16 MiB on v5e) and drop the
    # (B*S)^2 block-diagonal mask design, which does not scale.


# ---------------- one-time parameter fusion (weight-load time, not per call) ----------------

def fuse_vit_attention_params(wq, bq, wk, bk, wv, bv, wo, bo):
    """Fuse Q/K/V weights and fold the 1/sqrt(head_dim) scale into Wq/bq. Done once."""
    scale = 1.0 / math.sqrt(HEAD_DIM)
    wqkv = jnp.concatenate([wq * scale, wk, wv], axis=1).astype(jnp.bfloat16)   # (H, 3H)
    bqkv = jnp.concatenate([bq * scale, bk, bv], axis=1).astype(jnp.float32)    # (1, 3H)
    return wqkv, bqkv, wo.astype(jnp.bfloat16), bo.astype(jnp.float32)


def make_block_diag_mask(batch, seq, num_heads):
    """Additive mask (pre-tiled over heads): query of batch b only attends to keys of b."""
    n = batch * seq
    row = jnp.arange(num_heads * n) % n
    col = jnp.arange(n)
    return jnp.where((row[:, None] // seq) == (col[None, :] // seq),
                     0.0, -1e30).astype(jnp.float32)                            # (nH*n, n)


# ---------------- per-call wrapper (no weight prep in the hot path) ----------------

def vit_attention(x, wqkv, bqkv, wo, bo, mask_bias):
    """x: [B, S, H]; wqkv: [H, 3H] bf16; bqkv: [1, 3H] f32; wo: [H, H] bf16; bo: [1, H] f32."""
    B, S, H = x.shape
    N = B * S
    x2 = x.reshape(N, H).astype(jnp.bfloat16)

    vmem = pl.BlockSpec(memory_space=pltpu.MemorySpace.VMEM)
    # Whole problem fits in VMEM -> no grid: a (B,) grid would only add fixed per-step
    # pipeline overhead (~0.35 us) on single-TC v5e/v6e at this size.
    out = pl.pallas_call(
        vit_attention_kernel,
        out_shape=jax.ShapeDtypeStruct((N, H), jnp.bfloat16),
        in_specs=[vmem, vmem, vmem, vmem, vmem, vmem],
        out_specs=vmem,
    )(x2, wqkv, wo, bqkv, bo, mask_bias)
    return out.reshape(B, S, H).astype(x.dtype)


# ---------------- pure-JAX (f32) reference mirroring the PyTorch forward ----------------

def vit_attention_ref(x, wq, bq, wk, bk, wv, bv, wo, bo):
    B, S, H = x.shape

    def heads(t):   # (B, S, H) -> (B, nH, S, dh)
        return t.reshape(B, S, NUM_HEADS, HEAD_DIM).transpose(0, 2, 1, 3)

    q = heads(x @ wq + bq)
    k = heads(x @ wk + bk)
    v = heads(x @ wv + bv)
    scores = jnp.einsum("bhqd,bhkd->bhqk", q, k) / math.sqrt(HEAD_DIM)
    probs = jax.nn.softmax(scores, axis=-1)
    ctx = jnp.einsum("bhqk,bhkd->bhqd", probs, v)
    ctx = ctx.transpose(0, 2, 1, 3).reshape(B, S, H)
    return ctx @ wo + bo


if __name__ == "__main__":
    key = jax.random.PRNGKey(0)
    ks = jax.random.split(key, 9)

    x = jax.random.normal(ks[0], (BATCH, SEQ, HIDDEN), jnp.float32)

    # nn.Linear-style init: uniform(-1/sqrt(fan_in), 1/sqrt(fan_in)); stored as [in, out].
    bound = 1.0 / math.sqrt(HIDDEN)

    def lin(kw, kb):
        w = jax.random.uniform(kw, (HIDDEN, HIDDEN), jnp.float32, -bound, bound)
        b = jax.random.uniform(kb, (1, HIDDEN), jnp.float32, -bound, bound)
        return w, b

    wq, bq = lin(ks[1], ks[2])
    wk, bk = lin(ks[3], ks[4])
    wv, bv = lin(ks[5], ks[6])
    wo, bo = lin(ks[7], ks[8])

    # One-time prep (hoisted out of the per-call path).
    wqkv, bqkv, wo_b, bo_f = fuse_vit_attention_params(wq, bq, wk, bk, wv, bv, wo, bo)
    mask_bias = make_block_diag_mask(BATCH, SEQ, NUM_HEADS)

    out = vit_attention(x, wqkv, bqkv, wo_b, bo_f, mask_bias)
    out = jax.block_until_ready(out)

    ref = vit_attention_ref(x, wq, bq, wk, bk, wv, bv, wo, bo)
    assert out.shape == (BATCH, SEQ, HIDDEN)
    # Tolerance loosened vs a pure-f32 kernel: matmul operands and the final store are
    # bf16 (f32 accumulation) and the softmax denominator uses the EUP approx reciprocal.
    assert jnp.allclose(out, ref, atol=3e-2, rtol=3e-2), "Pallas kernel mismatch vs JAX reference"

    print("KERNEL_OK")
</pallas_src>

<mosaic_0001>
module attributes {stable_mosaic.version = 11 : i64} {
  func.func @vit_attention_kernel(%arg0: memref<16x32xbf16, #tpu.memory_space<vmem>>, %arg1: memref<32x96xbf16, #tpu.memory_space<vmem>>, %arg2: memref<32x32xbf16, #tpu.memory_space<vmem>>, %arg3: memref<1x96xf32, #tpu.memory_space<vmem>>, %arg4: memref<1x32xf32, #tpu.memory_space<vmem>>, %arg5: memref<64x16xf32, #tpu.memory_space<vmem>>, %arg6: memref<16x32xbf16, #tpu.memory_space<vmem>>) attributes {dimension_semantics = [], scalar_prefetch = 0 : i64, scratch_operands = 0 : i64, tpu.core_type = #tpu.core_type<tc>} {
    %c0 = arith.constant 0 : index
    %c0_0 = arith.constant 0 : index
    %0 = vector.load %arg0[%c0, %c0_0] : memref<16x32xbf16, #tpu.memory_space<vmem>>, vector<16x32xbf16>
    %c0_1 = arith.constant 0 : index
    %c0_2 = arith.constant 0 : index
    %1 = vector.load %arg1[%c0_1, %c0_2] : memref<32x96xbf16, #tpu.memory_space<vmem>>, vector<32x96xbf16>
    %c0_3 = arith.constant 0 : index
    %c0_4 = arith.constant 0 : index
    %2 = vector.load %arg2[%c0_3, %c0_4] : memref<32x32xbf16, #tpu.memory_space<vmem>>, vector<32x32xbf16>
    %c0_5 = arith.constant 0 : index
    %c0_6 = arith.constant 0 : index
    %3 = vector.load %arg3[%c0_5, %c0_6] : memref<1x96xf32, #tpu.memory_space<vmem>>, vector<1x96xf32>
    %c0_7 = arith.constant 0 : index
    %c0_8 = arith.constant 0 : index
    %4 = vector.load %arg4[%c0_7, %c0_8] : memref<1x32xf32, #tpu.memory_space<vmem>>, vector<1x32xf32>
    %c0_9 = arith.constant 0 : index
    %c0_10 = arith.constant 0 : index
    %5 = vector.load %arg5[%c0_9, %c0_10] : memref<64x16xf32, #tpu.memory_space<vmem>>, vector<64x16xf32>
    %cst = arith.constant dense<0.000000e+00> : vector<16x96xf32>
    %6 = tpu.matmul %0, %1, %cst {dimension_numbers = #tpu.dot_dimension_numbers<[1], [0], [0], [1], [0, 0, 1, 1], [], []>} : vector<16x32xbf16>, vector<32x96xbf16>, vector<16x96xf32> -> vector<16x96xf32>
    %7 = vector.broadcast %3 : vector<1x96xf32> to vector<16x96xf32>
    %8 = arith.addf %6, %7 : vector<16x96xf32>
    %9 = arith.truncf %8 : vector<16x96xf32> to vector<16x96xbf16>
    %10 = vector.extract_strided_slice %9 {offsets = [0, 0], sizes = [16, 32], strides = [1, 1]} : vector<16x96xbf16> to vector<16x32xbf16>
    %11 = vector.extract_strided_slice %9 {offsets = [0, 64], sizes = [16, 32], strides = [1, 1]} : vector<16x96xbf16> to vector<16x32xbf16>
    %12 = vector.extract_strided_slice %8 {offsets = [0, 32], sizes = [16, 32], strides = [1, 1]} : vector<16x96xf32> to vector<16x32xf32>
    %13 = tpu.transpose %12, [1, 0] : vector<16x32xf32> -> vector<32x16xf32>
    %14 = arith.truncf %13 : vector<32x16xf32> to vector<32x16xbf16>
    %15 = vector.extract_strided_slice %10 {offsets = [0, 0], sizes = [16, 8], strides = [1, 1]} : vector<16x32xbf16> to vector<16x8xbf16>
    %16 = vector.extract_strided_slice %14 {offsets = [0, 0], sizes = [8, 16], strides = [1, 1]} : vector<32x16xbf16> to vector<8x16xbf16>
    %cst_11 = arith.constant dense<0.000000e+00> : vector<16x16xf32>
    %17 = tpu.matmul %15, %16, %cst_11 {dimension_numbers = #tpu.dot_dimension_numbers<[1], [0], [0], [1], [0, 0, 1, 1], [], []>} : vector<16x8xbf16>, vector<8x16xbf16>, vector<16x16xf32> -> vector<16x16xf32>
    %18 = vector.extract_strided_slice %10 {offsets = [0, 8], sizes = [16, 8], strides = [1, 1]} : vector<16x32xbf16> to vector<16x8xbf16>
    %19 = vector.extract_strided_slice %14 {offsets = [8, 0], sizes = [8, 16], strides = [1, 1]} : vector<32x16xbf16> to vector<8x16xbf16>
    %cst_12 = arith.constant dense<0.000000e+00> : vector<16x16xf32>
    %20 = tpu.matmul %18, %19, %cst_12 {dimension_numbers = #tpu.dot_dimension_numbers<[1], [0], [0], [1], [0, 0, 1, 1], [], []>} : vector<16x8xbf16>, vector<8x16xbf16>, vector<16x16xf32> -> vector<16x16xf32>
    %21 = vector.extract_strided_slice %10 {offsets = [0, 16], sizes = [16, 8], strides = [1, 1]} : vector<16x32xbf16> to vector<16x8xbf16>
    %22 = vector.extract_strided_slice %14 {offsets = [16, 0], sizes = [8, 16], strides = [1, 1]} : vector<32x16xbf16> to vector<8x16xbf16>
    %cst_13 = arith.constant dense<0.000000e+00> : vector<16x16xf32>
    %23 = tpu.matmul %21, %22, %cst_13 {dimension_numbers = #tpu.dot_dimension_numbers<[1], [0], [0], [1], [0, 0, 1, 1], [], []>} : vector<16x8xbf16>, vector<8x16xbf16>, vector<16x16xf32> -> vector<16x16xf32>
    %24 = vector.extract_strided_slice %10 {offsets = [0, 24], sizes = [16, 8], strides = [1, 1]} : vector<16x32xbf16> to vector<16x8xbf16>
    %25 = vector.extract_strided_slice %14 {offsets = [24, 0], sizes = [8, 16], strides = [1, 1]} : vector<32x16xbf16> to vector<8x16xbf16>
    %cst_14 = arith.constant dense<0.000000e+00> : vector<16x16xf32>
    %26 = tpu.matmul %24, %25, %cst_14 {dimension_numbers = #tpu.dot_dimension_numbers<[1], [0], [0], [1], [0, 0, 1, 1], [], []>} : vector<16x8xbf16>, vector<8x16xbf16>, vector<16x16xf32> -> vector<16x16xf32>
    %27 = tpu.concatenate %17, %20, %23, %26 in 0 : vector<16x16xf32>, vector<16x16xf32>, vector<16x16xf32>, vector<16x16xf32> -> vector<64x16xf32>
    %28 = arith.addf %27, %5 : vector<64x16xf32>
    %cst_15 = arith.constant dense<0xFF800000> : vector<64xf32>
    %29 = vector.multi_reduction <maximumf>, %28, %cst_15 [1] : vector<64x16xf32> to vector<64xf32>
    %30 = vector.shape_cast %29 : vector<64xf32> to vector<64x1xf32>
    %31 = vector.broadcast %30 : vector<64x1xf32> to vector<64x16xf32>
    %32 = arith.subf %28, %31 : vector<64x16xf32>
    %33 = math.exp %32 : vector<64x16xf32>
    %cst_16 = arith.constant dense<0.000000e+00> : vector<64xf32>
    %34 = vector.multi_reduction <add>, %33, %cst_16 [1] : vector<64x16xf32> to vector<64xf32>
    %35 = vector.shape_cast %34 : vector<64xf32> to vector<64x1xf32>
    %36 = tpu.reciprocal %35 {approx = true} : vector<64x1xf32> -> vector<64x1xf32>
    %37 = vector.broadcast %36 : vector<64x1xf32> to vector<64x16xf32>
    %38 = arith.mulf %33, %37 : vector<64x16xf32>
    %39 = arith.truncf %38 : vector<64x16xf32> to vector<64x16xbf16>
    %40 = vector.extract_strided_slice %39 {offsets = [0, 0], sizes = [16, 16], strides = [1, 1]} : vector<64x16xbf16> to vector<16x16xbf16>
    %41 = vector.extract_strided_slice %11 {offsets = [0, 0], sizes = [16, 8], strides = [1, 1]} : vector<16x32xbf16> to vector<16x8xbf16>
    %cst_17 = arith.constant dense<0.000000e+00> : vector<16x8xf32>
    %42 = tpu.matmul %40, %41, %cst_17 {dimension_numbers = #tpu.dot_dimension_numbers<[1], [0], [0], [1], [0, 0, 1, 1], [], []>} : vector<16x16xbf16>, vector<16x8xbf16>, vector<16x8xf32> -> vector<16x8xf32>
    %43 = vector.extract_strided_slice %39 {offsets = [16, 0], sizes = [16, 16], strides = [1, 1]} : vector<64x16xbf16> to vector<16x16xbf16>
    %44 = vector.extract_strided_slice %11 {offsets = [0, 8], sizes = [16, 8], strides = [1, 1]} : vector<16x32xbf16> to vector<16x8xbf16>
    %cst_18 = arith.constant dense<0.000000e+00> : vector<16x8xf32>
    %45 = tpu.matmul %43, %44, %cst_18 {dimension_numbers = #tpu.dot_dimension_numbers<[1], [0], [0], [1], [0, 0, 1, 1], [], []>} : vector<16x16xbf16>, vector<16x8xbf16>, vector<16x8xf32> -> vector<16x8xf32>
    %46 = vector.extract_strided_slice %39 {offsets = [32, 0], sizes = [16, 16], strides = [1, 1]} : vector<64x16xbf16> to vector<16x16xbf16>
    %47 = vector.extract_strided_slice %11 {offsets = [0, 16], sizes = [16, 8], strides = [1, 1]} : vector<16x32xbf16> to vector<16x8xbf16>
    %cst_19 = arith.constant dense<0.000000e+00> : vector<16x8xf32>
    %48 = tpu.matmul %46, %47, %cst_19 {dimension_numbers = #tpu.dot_dimension_numbers<[1], [0], [0], [1], [0, 0, 1, 1], [], []>} : vector<16x16xbf16>, vector<16x8xbf16>, vector<16x8xf32> -> vector<16x8xf32>
    %49 = vector.extract_strided_slice %39 {offsets = [48, 0], sizes = [16, 16], strides = [1, 1]} : vector<64x16xbf16> to vector<16x16xbf16>
    %50 = vector.extract_strided_slice %11 {offsets = [0, 24], sizes = [16, 8], strides = [1, 1]} : vector<16x32xbf16> to vector<16x8xbf16>
    %cst_20 = arith.constant dense<0.000000e+00> : vector<16x8xf32>
    %51 = tpu.matmul %49, %50, %cst_20 {dimension_numbers = #tpu.dot_dimension_numbers<[1], [0], [0], [1], [0, 0, 1, 1], [], []>} : vector<16x16xbf16>, vector<16x8xbf16>, vector<16x8xf32> -> vector<16x8xf32>
    %52 = tpu.concatenate %42, %45, %48, %51 in 1 : vector<16x8xf32>, vector<16x8xf32>, vector<16x8xf32>, vector<16x8xf32> -> vector<16x32xf32>
    %53 = arith.truncf %52 : vector<16x32xf32> to vector<16x32xbf16>
    %cst_21 = arith.constant dense<0.000000e+00> : vector<16x32xf32>
    %54 = tpu.matmul %53, %2, %cst_21 {dimension_numbers = #tpu.dot_dimension_numbers<[1], [0], [0], [1], [0, 0, 1, 1], [], []>} : vector<16x32xbf16>, vector<32x32xbf16>, vector<16x32xf32> -> vector<16x32xf32>
    %55 = vector.broadcast %4 : vector<1x32xf32> to vector<16x32xf32>
    %56 = arith.addf %54, %55 : vector<16x32xf32>
    %57 = arith.truncf %56 : vector<16x32xf32> to vector<16x32xbf16>
    %c0_22 = arith.constant 0 : index
    %c0_23 = arith.constant 0 : index
    %58 = vector.load %arg6[%c0_22, %c0_23] : memref<16x32xbf16, #tpu.memory_space<vmem>>, vector<16x32xbf16>
    tpu.vector_store %arg6[%c0_22, %c0_23], %57 {strides = array<i32>} : memref<16x32xbf16, #tpu.memory_space<vmem>>, vector<16x32xbf16>,
    return
  }
}

</mosaic_0001>

<bundles_post_ra>
// kernel: tpu_custom_call.1
= control target key start
LH: loop header
LB: loop body
LE: loop exit
PB: predicated region body
PF: predicated region fallthrough
CT: control target
= control target key end

     0   :  { %v963_v1 = vmov 0.0   ;;  %vm964_vm0 = vmmov 0   ;;  %s1140_s0 = inlined_call_operand.vmem [shape: bf16[16,32], index: 0, kind: input, shape index: {}]   ;;  %s1141_s1 = inlined_call_operand.vmem [shape: bf16[32,96], index: 1, kind: input, shape index: {}]   ;;  %s1142_s2 = inlined_call_operand.vmem [shape: bf16[32,32], index: 2, kind: input, shape index: {}]   ;;  %s1143_s3 = inlined_call_operand.vmem [shape: f32[1,96], index: 3, kind: input, shape index: {}]   ;;  %s1144_s4 = inlined_call_operand.vmem [shape: f32[1,32], index: 4, kind: input, shape index: {}]   ;;  %s1145_s5 = inlined_call_operand.vmem [shape: f32[64,16], index: 5, kind: input, shape index: {}]   ;;  %s1146_s6 = inlined_call_operand.hbm [shape: bf16[16,32], index: 6, kind: output, shape index: {}]  }
   0x1   :  { %v904_v0 = vld [vmem:[%s1141_s1 + $0x8] sm:$0xff]   ;;  %810 = vmatprep.subr.bf16.mxu0 %v963_v1  ;;  %818 = vmatprep.subr.bf16.mxu1 %v963_v1  ;;  %v905_v2 = vld [vmem:[%s1141_s1] sm:$0xff]  }
   0x2   :  { %811 = vmatpush3.bf16.msra.mxu0 %v904_v0  ;;  %814 = vmatprep.mubr.msk.bf16.mxu0 %vm964_vm0, %v963_v1 }
   0x3   :  { %812 = vmatprep.subr.bf16.mxu0 %v963_v1  ;;  %820 = vmatprep.mubr.msk.bf16.mxu1 %vm964_vm0, %v963_v1 }
   0x4   :  { %11 = vsyncpa [#allocation3], 0  ;;  %v906_v3 = vld [vmem:[%s1140_s0] sm:$0xff]   ;;  %vm68_vm1 = vcmask 261120   ;;  %s965_s28 = smov 96   ;;  %s966_s0 = smov 120  }
   0x5   :  { %v767_v4 = vld [vmem:[%s1143_s3] ss:$0 sm:$0xff]  ;;  %s967_s29 = smov 104   ;;  %s968_s30 = smov 112   ;;  %vm160_vm2 = vcmask 1043456   ;;  %vm156_vm3 = vcmask 64512  }
   0x6   :  { %813 = vmatpush3.bf16.msra.mxu0 %v905_v2  ;;  %v37_v29 = vld [vmem:[%s1145_s5] sm:$0xff]  ;;  %vm365_vm4 = vcmask 130048   ;;  %v38_v33 = vld [vmem:[%s1145_s5 + $0x8] sm:$0xff]  ;;  %v39_v38 = vld [vmem:[%s1145_s5 + $0x10] sm:$0xff]  ;;  %s969_s22 = smov 56   ;;  %s970_s23 = smov 48  }
   0x7   :  { %830 = vmatprep.subr.bf16.mxu0 %v963_v1  ;;  %v41_v39 = vld [vmem:[%s1145_s5 + $0x20] sm:$0xff]  ;;  %v40_v47 = vld [vmem:[%s1145_s5 + $0x18] sm:$0xff]  ;;  %v42_v51 = vld [vmem:[%s1145_s5 + $0x28] sm:$0xff]  ;;  %s971_s24 = smov 64   ;;  %s973_s1 = smov 8   ;;  %vm674_vm5 = vcmask 195584  }
   0x8   :  { %v43_v58 = vld [vmem:[%s1145_s5 + $0x30] sm:$0xff]  ;;  %v44_v63 = vld [vmem:[%s1145_s5 + $0x38] sm:$0xff]  ;;  %s972_s5 = smov 40   ;;  %vm748_vm6 = vcmask 257024   ;;  %s976_s3 = smov [#allocation2]  }
   0x9   :  { %815 = vmatmul.mubr.msk.bf16.vlgmr.msra.gmra.mxu0 %vm68_vm1, %v906_v3  ;;  %s756_s7 = sshll.u32 %s976_s3, 4  ;;  %s757_s7 = int_to_ptr.vmem [resolvable:$true] %s756_s7 }
   0xa   :  { %832 = vmatprep.mubr.msk.bf16.mxu0 %vm964_vm0, %v963_v1  ;;  %s941_s8 = scalar_lea.vmem %s757_s7, 128  ;;  %p946_p1 = scmp.lt.s32.totalorder %s757_s7, %s757_s7 }
   0xb   :  { %p942_p0 = scmp.ne.s32.totalorder %s757_s7, %s941_s8  ;;  %p947_p2 = scmp.lt.s32.totalorder %s941_s8, %s941_s8 }
   0xd   :  { %p948_p3 = por %p947_p2, %p946_p1 }
   0xf   :  { %p949_p4 = pnand %p948_p3, %p942_p0 }
  0xc9   :  { %v106_v5 = vpop.f32.mrf.mxu0 }
  0xca   :  { %v107_v6 = vadd.f32 %v767_v4, %v106_v5 }
  0xcb   :  { %v816_v7 = vpop.f32.mrf.mxu0 }
  0xcc   :  { %116 = vrot.lane.b32.xlu0 %v107_v6, %s965_s28 }
  0xcd   :  { %v109_v8 = vpop.f32.mrf.mxu0 }
  0xce   :  { %v110_v9 = vadd.f32 %v767_v4, %v109_v8 }
  0xcf   :  { %v817_v10 = vpop.f32.mrf.mxu0 }
  0xd0   :  { %v1036_v11 = vpack.c.bf16 %v110_v9, %v107_v6  ;;  %118 = vrot.lane.b32.xlu0 %v110_v9, %s965_s28 }
  0xd2   :  { %206 = vrot.lane.b32.xlu1 %v1036_v11, %s966_s0  ;;  %s974_s0 = smov 16  }
  0xd4   :  { %306 = vrot.lane.b32.xlu0 %v1036_v11, %s967_s29  ;;  %s975_s29 = smov 24  }
  0xd6   :  { %257 = vrot.lane.b32.xlu1 %v1036_v11, %s968_s30 }
 0x13e   :  { %v117_v12 = vpop.permute.xlu0 %116 }
 0x13f   :  { %122 = vxpose.xlu1.b32.start [1/2] (short) (narrow) %v117_v12, 32 }
 0x142   :  { %v119_v13 = vpop.permute.xlu0 %118 }
 0x143   :  { %123 = vxpose.xlu1.b32.end [2/2] (short) (narrow) %v119_v13, 32 }
 0x144   :  { %v207_v14 = vpop.permute.xlu1 %206 }
 0x146   :  { %v307_v28 = vpop.permute.xlu0 %306 }
 0x148   :  { %v258_v15 = vpop.permute.xlu1 %257 }
 0x1bb   :  { %v138_v16 = vpop.trf.xlu1 }
 0x1bf   :  { %v139_v17 = vpop.trf.xlu1 }
 0x1c0   :  { %v154_v18 = vpack.c.bf16 %v139_v17, %v138_v16 }
 0x1c2   :  { %v209_v19 = vrot.slane %v154_v18, 4  ;;  %v162_v20 = vsel %vm160_vm2, %v154_v18, 0 }
 0x1c3   :  { %819 = vmatpush3.bf16.msra.mxu1 %v162_v20  ;;  %v140_v21 = vpop.trf.xlu1 }
 0x1c4   :  { %824 = vmatprep.subr.bf16.mxu1 %v963_v1  ;;  %v214_v22 = vsel %vm160_vm2, %v209_v19, 0 }
 0x1c6   :  { %821 = vmatmul.mubr.msk.bf16.vlgmr.msra.gmra.mxu1 %vm156_vm3, %v1036_v11 }
 0x1c7   :  { %825 = vmatpush3.bf16.msra.mxu1 %v214_v22  ;;  %v141_v23 = vpop.trf.xlu1  ;;  %826 = vmatprep.mubr.msk.bf16.mxu1 %vm964_vm0, %v963_v1 }
 0x1c8   :  { %v155_v24 = vpack.c.bf16 %v141_v23, %v140_v21  ;;  %836 = vmatprep.subr.bf16.mxu1 %v963_v1 }
 0x1ca   :  { %v263_v25 = vsel %vm160_vm2, %v155_v24, 0  ;;  %v309_v26 = vrot.slane %v155_v24, 4 }
 0x1cb   :  { %831 = vmatpush3.bf16.msra.mxu0 %v263_v25 }
 0x1cc   :  { %v314_v27 = vsel %vm160_vm2, %v309_v26, 0  ;;  %842 = vmatprep.subr.bf16.mxu0 %v963_v1 }
 0x1ce   :  { %827 = vmatmul.mubr.msk.bf16.vlgmr.msra.gmra.mxu1 %vm156_vm3, %v207_v14  ;;  %833 = vmatmul.mubr.msk.bf16.vlgmr.msra.gmra.mxu0 %vm156_vm3, %v258_v15 }
 0x1cf   :  { %837 = vmatpush3.bf16.msra.mxu1 %v314_v27  ;;  %838 = vmatprep.mubr.msk.bf16.mxu1 %vm964_vm0, %v963_v1 }
 0x1d0   :  { %848 = vmatprep.subr.bf16.mxu1 %v963_v1  ;;  %844 = vmatprep.mubr.msk.bf16.mxu0 %vm964_vm0, %v963_v1 }
 0x1d6   :  { %839 = vmatmul.mubr.msk.bf16.vlgmr.msra.gmra.mxu1 %vm156_vm3, %v307_v28 }
 0x1d7   :  { %850 = vmatprep.mubr.msk.bf16.mxu1 %vm964_vm0, %v963_v1 }
 0x286   :  { %v198_v30 = vpop.f32.mrf.mxu1 }
 0x287   :  { %v357_v31 = vadd.f32 %v198_v30, %v37_v29 }
 0x288   :  { %v822_v32 = vpop.f32.mrf.mxu1 }
 0x289   :  { %v366_v34 = vsel %vm365_vm4, %v357_v31, -inf }
 0x28a   :  { %367 = vmax.xlane.f32.xlu0 %v366_v34  ;;  %v201_v35 = vpop.f32.mrf.mxu1 }
 0x28b   :  { %v358_v36 = vadd.f32 %v201_v35, %v38_v33 }
 0x28c   :  { %v823_v37 = vpop.f32.mrf.mxu1 }
 0x28d   :  { %v369_v40 = vsel %vm365_vm4, %v358_v36, -inf }
 0x28e   :  { %370 = vmax.xlane.f32.xlu0 %v369_v40  ;;  %v250_v41 = vpop.f32.mrf.mxu1  ;;  %v299_v42 = vpop.f32.mrf.mxu0 }
 0x28f   :  { %v359_v43 = vadd.f32 %v250_v41, %v39_v38  ;;  %v361_v44 = vadd.f32 %v299_v42, %v41_v39 }
 0x290   :  { %v828_v45 = vpop.f32.mrf.mxu1  ;;  %v834_v46 = vpop.f32.mrf.mxu0 }
 0x291   :  { %v372_v48 = vsel %vm365_vm4, %v359_v43, -inf  ;;  %v378_v49 = vsel %vm365_vm4, %v361_v44, -inf }
 0x292   :  { %373 = vmax.xlane.f32.xlu0 %v372_v48  ;;  %v253_v50 = vpop.f32.mrf.mxu1  ;;  %379 = vmax.xlane.f32.xlu1 %v378_v49  ;;  %v302_v52 = vpop.f32.mrf.mxu0 }
 0x293   :  { %v360_v53 = vadd.f32 %v253_v50, %v40_v47  ;;  %v362_v56 = vadd.f32 %v302_v52, %v42_v51 }
 0x294   :  { %v829_v54 = vpop.f32.mrf.mxu1  ;;  %v835_v55 = vpop.f32.mrf.mxu0 }
 0x295   :  { %v375_v57 = vsel %vm365_vm4, %v360_v53, -inf  ;;  %v381_v62 = vsel %vm365_vm4, %v362_v56, -inf }
 0x296   :  { %376 = vmax.xlane.f32.xlu0 %v375_v57  ;;  %v350_v59 = vpop.f32.mrf.mxu1 }
 0x297   :  { %v363_v61 = vadd.f32 %v350_v59, %v43_v58 }
 0x298   :  { %v840_v60 = vpop.f32.mrf.mxu1 }
 0x299   :  { %v384_v4 = vsel %vm365_vm4, %v363_v61, -inf }
 0x29a   :  { %v353_v0 = vpop.f32.mrf.mxu1  ;;  %382 = vmax.xlane.f32.xlu0 %v381_v62 }
 0x29b   :  { %v364_v3 = vadd.f32 %v353_v0, %v44_v63 }
 0x29c   :  { %v841_v2 = vpop.f32.mrf.mxu1 }
 0x29d   :  { %v387_v5 = vsel %vm365_vm4, %v364_v3, -inf }
 0x29e   :  { %385 = vmax.xlane.f32.xlu0 %v384_v4 }
 0x2a2   :  { %388 = vmax.xlane.f32.xlu0 %v387_v5 }
 0x2a3   :  { %505 = vrot.lane.b32.xlu1 %v1036_v11, %s969_s22 }
 0x2a7   :  { %552 = vrot.lane.b32.xlu1 %v1036_v11, %s970_s23 }
 0x2b8   :  { %458 = vrot.lane.b32.xlu0 %v1036_v11, %s971_s24 }
 0x313   :  { %v368_v6 = vpop.xlane.xlu0 %367 }
 0x314   :  { %v390_v7 = vsub.f32 %v357_v31, %v368_v6 }
 0x316   :  { %v398_v8 = vmul.f32 1.442695, %v390_v7 }
 0x317   :  { %v371_v9 = vpop.xlane.xlu0 %370 }
 0x318   :  { %909 = vpow2.f32 %v398_v8  ;;  %v391_v10 = vsub.f32 %v358_v36, %v371_v9 }
 0x31a   :  { %v400_v12 = vmul.f32 1.442695, %v391_v10 }
 0x31b   :  { %v374_v13 = vpop.xlane.xlu0 %373  ;;  %v380_v14 = vpop.xlane.xlu1 %379 }
 0x31c   :  { %911 = vpow2.f32 %v400_v12  ;;  %v392_v15 = vsub.f32 %v359_v43, %v374_v13  ;;  %v394_v16 = vsub.f32 %v361_v44, %v380_v14 }
 0x31e   :  { %v402_v17 = vmul.f32 1.442695, %v392_v15  ;;  %v406_v18 = vmul.f32 1.442695, %v394_v16 }
 0x31f   :  { %v377_v19 = vpop.xlane.xlu0 %376  ;;  %v506_v20 = vpop.permute.xlu1 %505 }
 0x320   :  { %913 = vpow2.f32 %v402_v17  ;;  %v393_v21 = vsub.f32 %v360_v53, %v377_v19  ;;  %849 = vmatpush3.bf16.msra.mxu1 %v506_v20 }
 0x321   :  { %860 = vmatprep.subr.bf16.mxu1 %v963_v1  ;;  %915 = vpow2.f32 %v406_v18 }
 0x322   :  { %v404_v22 = vmul.f32 1.442695, %v393_v21  ;;  %v907_v21 = vld [vmem:[%s1142_s2 + $0x8] sm:$0xff]  }
 0x323   :  { %v383_v23 = vpop.xlane.xlu0 %382  ;;  %v553_v60 = vpop.permute.xlu1 %552 }
 0x324   :  { %v395_v24 = vsub.f32 %v362_v56, %v383_v23  ;;  %917 = vpow2.f32 %v404_v22 }
 0x325   :  { %v910_v25 = vpop.eup %909 }
 0x326   :  { %v408_v26 = vmul.f32 1.442695, %v395_v24  ;;  %v414_v27 = vsel %vm365_vm4, %v910_v25, 0.0 }
 0x327   :  { %415 = vadd.xlane.f32.xlu0 %v414_v27  ;;  %v386_v28 = vpop.xlane.xlu0 %385 }
 0x328   :  { %v396_v29 = vsub.f32 %v363_v61, %v386_v28  ;;  %919 = vpow2.f32 %v408_v26  ;;  %v908_v28 = vld [vmem:[%s1142_s2] sm:$0xff]  }
 0x329   :  { %v912_v30 = vpop.eup %911 }
 0x32a   :  { %v410_v31 = vmul.f32 1.442695, %v396_v29  ;;  %v417_v32 = vsel %vm365_vm4, %v912_v30, 0.0 }
 0x32b   :  { %418 = vadd.xlane.f32.xlu0 %v417_v32  ;;  %v389_v33 = vpop.xlane.xlu0 %388 }
 0x32c   :  { %v397_v34 = vsub.f32 %v364_v3, %v389_v33  ;;  %921 = vpow2.f32 %v410_v31 }
 0x32d   :  { %v914_v35 = vpop.eup %913 }
 0x32e   :  { %v412_v36 = vmul.f32 1.442695, %v397_v34  ;;  %v420_v37 = vsel %vm365_vm4, %v914_v35, 0.0  ;;  %v916_v38 = vpop.eup %915 }
 0x32f   :  { %421 = vadd.xlane.f32.xlu0 %v420_v37  ;;  %v459_v39 = vpop.permute.xlu0 %458  ;;  %v426_v40 = vsel %vm365_vm4, %v916_v38, 0.0 }
 0x330   :  { %843 = vmatpush3.bf16.msra.mxu0 %v459_v39  ;;  %923 = vpow2.f32 %v412_v36 }
 0x331   :  { %854 = vmatprep.subr.bf16.mxu0 %v963_v1  ;;  %v918_v41 = vpop.eup %917 }
 0x332   :  { %v423_v42 = vsel %vm365_vm4, %v918_v41, 0.0 }
 0x333   :  { %427 = vadd.xlane.f32.xlu0 %v426_v40 }
 0x335   :  { %v920_v43 = vpop.eup %919 }
 0x336   :  { %v429_v44 = vsel %vm365_vm4, %v920_v43, 0.0 }
 0x337   :  { %424 = vadd.xlane.f32.xlu0 %v423_v42 }
 0x339   :  { %v922_v45 = vpop.eup %921 }
 0x33a   :  { %v432_v46 = vsel %vm365_vm4, %v922_v45, 0.0 }
 0x33b   :  { %430 = vadd.xlane.f32.xlu0 %v429_v44 }
 0x33d   :  { %v924_v47 = vpop.eup %923 }
 0x33e   :  { %v435_v48 = vsel %vm365_vm4, %v924_v47, 0.0 }
 0x33f   :  { %433 = vadd.xlane.f32.xlu0 %v432_v46 }
 0x343   :  { %436 = vadd.xlane.f32.xlu0 %v435_v48 }
 0x359   :  { %599 = vrot.lane.b32.xlu0 %v1036_v11, %s972_s5 }
 0x3b0   :  { %v416_v49 = vpop.xlane.xlu0 %415 }
 0x3b1   :  { %925 = vrcp.f32 %v416_v49 }
 0x3b4   :  { %v419_v50 = vpop.xlane.xlu0 %418 }
 0x3b5   :  { %927 = vrcp.f32 %v419_v50 }
 0x3b8   :  { %v422_v51 = vpop.xlane.xlu0 %421 }
 0x3b9   :  { %929 = vrcp.f32 %v422_v51 }
 0x3bc   :  { %v428_v52 = vpop.xlane.xlu0 %427 }
 0x3be   :  { %v926_v53 = vpop.eup %925 }
 0x3bf   :  { %v446_v56 = vmul.f32 %v926_v53, %v910_v25 }
 0x3c0   :  { %v425_v54 = vpop.xlane.xlu0 %424 }
 0x3c1   :  { %931 = vrcp.f32 %v425_v54 }
 0x3c2   :  { %v928_v55 = vpop.eup %927  ;;  %933 = vrcp.f32 %v428_v52  ;;  %v780_v52 = vld [vmem:[%s1144_s4] ss:$0 sm:$0xff] }
 0x3c3   :  { %v447_v57 = vmul.f32 %v928_v55, %v912_v30 }
 0x3c4   :  { %v431_v58 = vpop.xlane.xlu0 %430 }
 0x3c5   :  { %935 = vrcp.f32 %v431_v58  ;;  %v454_v59 = vpack.c.bf16 %v447_v57, %v446_v56 }
 0x3c6   :  { %v930_v61 = vpop.eup %929 }
 0x3c7   :  { %845 = vmatmul.mubr.msk.bf16.vlgmr.msra.gmra.mxu0 %vm365_vm4, %v454_v59  ;;  %v448_v0 = vmul.f32 %v930_v61, %v914_v35 }
 0x3c8   :  { %855 = vmatpush3.bf16.msra.mxu0 %v553_v60  ;;  %v434_v11 = vpop.xlane.xlu0 %433  ;;  %856 = vmatprep.mubr.msk.bf16.mxu0 %vm964_vm0, %v963_v1 }
 0x3c9   :  { %866 = vmatprep.subr.bf16.mxu0 %v963_v1  ;;  %937 = vrcp.f32 %v434_v11 }
 0x3cc   :  { %v437_v62 = vpop.xlane.xlu0 %436 }
 0x3cd   :  { %939 = vrcp.f32 %v437_v62 }
 0x3ce   :  { %v932_v63 = vpop.eup %931 }
 0x3cf   :  { %v449_v2 = vmul.f32 %v932_v63, %v918_v41  ;;  %v934_v3 = vpop.eup %933 }
 0x3d0   :  { %v600_v6 = vpop.permute.xlu0 %599  ;;  %v450_v7 = vmul.f32 %v934_v3, %v916_v38 }
 0x3d1   :  { %v455_v4 = vpack.c.bf16 %v449_v2, %v448_v0 }
 0x3d2   :  { %v936_v5 = vpop.eup %935 }
 0x3d3   :  { %851 = vmatmul.mubr.msk.bf16.vlgmr.msra.gmra.mxu1 %vm365_vm4, %v455_v4  ;;  %v451_v8 = vmul.f32 %v936_v5, %v920_v43 }
 0x3d4   :  { %861 = vmatpush3.bf16.msra.mxu1 %v600_v6  ;;  %862 = vmatprep.mubr.msk.bf16.mxu1 %vm964_vm0, %v963_v1 }
 0x3d5   :  { %v456_v9 = vpack.c.bf16 %v451_v8, %v450_v7 }
 0x3d6   :  { %v938_v10 = vpop.eup %937 }
 0x3d7   :  { %857 = vmatmul.mubr.msk.bf16.vlgmr.msra.gmra.mxu0 %vm365_vm4, %v456_v9  ;;  %v452_v13 = vmul.f32 %v938_v10, %v922_v45 }
 0x3d8   :  { %870 = vmatprep.mubr.msk.bf16.mxu0 %vm964_vm0, %v963_v1  ;;  %867 = vmatpush3.bf16.msra.mxu0 %v907_v21 }
 0x3d9   :  { %868 = vmatprep.subr.bf16.mxu0 %v963_v1 }
 0x3da   :  { %v940_v12 = vpop.eup %939 }
 0x3db   :  { %v453_v14 = vmul.f32 %v940_v12, %v924_v47 }
 0x3dc   :  { %869 = vmatpush3.bf16.msra.mxu0 %v908_v28 }
 0x3dd   :  { %v457_v15 = vpack.c.bf16 %v453_v14, %v452_v13 }
 0x3df   :  { %863 = vmatmul.mubr.msk.bf16.vlgmr.msra.gmra.mxu1 %vm365_vm4, %v457_v15 }
 0x487   :  { %v498_v16 = vpop.f32.mrf.mxu0 }
 0x489   :  { %v846_v17 = vpop.f32.mrf.mxu0 }
 0x48b   :  { %v501_v18 = vpop.f32.mrf.mxu0 }
 0x48d   :  { %v847_v19 = vpop.f32.mrf.mxu0 }
 0x493   :  { %v545_v20 = vpop.f32.mrf.mxu1 }
 0x495   :  { %v852_v22 = vpop.f32.mrf.mxu1 }
 0x497   :  { %v548_v23 = vpop.f32.mrf.mxu1  ;;  %v592_v24 = vpop.f32.mrf.mxu0 }
 0x498   :  { %v889_v25 = vpack.i.bf16 %v548_v23, %v545_v20 }
 0x499   :  { %v853_v26 = vpop.f32.mrf.mxu1  ;;  %v858_v27 = vpop.f32.mrf.mxu0 }
 0x49a   :  { %890 = vrot.lane.b32.xlu1 %v889_v25, %s973_s1 }
 0x49b   :  { %v595_v29 = vpop.f32.mrf.mxu0 }
 0x49c   :  { %v894_v30 = vpack.i.bf16 %v595_v29, %v592_v24 }
 0x49d   :  { %v859_v31 = vpop.f32.mrf.mxu0 }
 0x49e   :  { %895 = vrot.lane.b32.xlu0 %v894_v30, %s974_s0 }
 0x49f   :  { %v639_v32 = vpop.f32.mrf.mxu1 }
 0x4a1   :  { %v864_v33 = vpop.f32.mrf.mxu1 }
 0x4a3   :  { %v642_v1 = vpop.f32.mrf.mxu1 }
 0x4a4   :  { %v899_v34 = vpack.i.bf16 %v642_v1, %v639_v32 }
 0x4a5   :  { %v865_v35 = vpop.f32.mrf.mxu1 }
 0x4a6   :  { %900 = vrot.lane.b32.xlu1 %v899_v34, %s975_s29 }
 0x50c   :  { %v891_v36 = vpop.permute.xlu1 %890 }
 0x50d   :  { %v893_v38 = vunpack.i.h.bf16 %v891_v36  ;;  %v892_v39 = vunpack.i.l.bf16 %v891_v36 }
 0x50f   :  { %v670_v43 = vsel %vm156_vm3, %v498_v16, %v892_v39  ;;  %v671_v44 = vsel %vm156_vm3, %v501_v18, %v893_v38 }
 0x510   :  { %v896_v37 = vpop.permute.xlu0 %895 }
 0x511   :  { %v898_v40 = vunpack.i.h.bf16 %v896_v37  ;;  %v897_v41 = vunpack.i.l.bf16 %v896_v37 }
 0x513   :  { %v673_v47 = vsel %vm365_vm4, %v671_v44, %v898_v40  ;;  %v672_v48 = vsel %vm365_vm4, %v670_v43, %v897_v41 }
 0x518   :  { %v901_v42 = vpop.permute.xlu1 %900 }
 0x519   :  { %v903_v45 = vunpack.i.h.bf16 %v901_v42  ;;  %v902_v46 = vunpack.i.l.bf16 %v901_v42 }
 0x51b   :  { %v675_v49 = vsel %vm674_vm5, %v672_v48, %v902_v46  ;;  %v676_v50 = vsel %vm674_vm5, %v673_v47, %v903_v45 }
 0x51c   :  { %v677_v51 = vpack.c.bf16 %v676_v50, %v675_v49 }
 0x51e   :  { %871 = vmatmul.mubr.msk.bf16.vlgmr.msra.gmra.mxu0 %vm68_vm1, %v677_v51 }
 0x5de   :  { %v733_v53 = vpop.f32.mrf.mxu0 }
 0x5df   :  { %v734_v54 = vadd.f32 %v780_v52, %v733_v53 }
 0x5e0   :  { %v872_v55 = vpop.f32.mrf.mxu0 }
 0x5e1   :  { %v786_v56 = vpack.c.bf16 %v734_v54, %v734_v54 }
 0x5e2   :  { %v736_v57 = vpop.f32.mrf.mxu0 }
 0x5e3   :  { %749 = vst.msk [vmem:[#allocation2] sm:$0xf] %vm748_vm6, %v786_v56  ;;  %v737_v58 = vadd.f32 %v780_v52, %v736_v57 }
 0x5e4   :  { %v873_v59 = vpop.f32.mrf.mxu0 }
 0x5e5   :  { %v787_v60 = vpack.c.bf16 %v737_v58, %v737_v58 }
 0x5e7   :  { %750 = vst.msk [vmem:[#allocation2 + $0x4] sm:$0xf] %vm748_vm6, %v787_v60 }
 0x5e8   :  { %952 = shalt.err (!%p949_p4)
}
 0x5e9   :  { %s977_s4 = smov 4  }
 0x5ea   :  { %762 = dma.vmem_to_hbm [thread:$0]  %s757_s7, 128, %s1146_s6, [#allocation3], %s971_s24, %s971_s24, %s977_s4  }
 0x5eb   :  { %961 = dma.done.wait [#allocation3], 128  }
 0x5ec   :  { %962 = vsyncadd [#allocation3], 4294967168 }
 0x5ed   :  { %766 = vsyncpa [#allocation3], 1 }

</bundles_post_ra>
